<compile_context>
chip_gen: v6e
topology: v6e:2x2x1
jax: 0.10.0
libtpu: 0.0.40
codegen_flags: <defaults>
</compile_context>

<pallas_src>
import functools

import jax
import jax.numpy as jnp
from jax.experimental import pallas as pl
from jax.experimental.pallas import tpu as pltpu

LN_EPS = 1e-5


def _layernorm_f32(x, gamma, beta):
    x = x.astype(jnp.float32)
    mean = jnp.mean(x, axis=-1, keepdims=True)
    var = jnp.mean((x - mean) * (x - mean), axis=-1, keepdims=True)
    return (x - mean) * jax.lax.rsqrt(var + LN_EPS) * gamma + beta


def _attention_kernel(xq_ref, xkv_ref, gamma_ref, beta_ref,
                      wq_ref, wk_ref, wv_ref, wo_ref, bo_ref,
                      o_ref, *, heads):
    gamma = gamma_ref[0].astype(jnp.float32)
    beta = beta_ref[0].astype(jnp.float32)

    # --- LayerNorm (f32 statistics), then downcast to bf16 for the MXU ---
    xq = _layernorm_f32(xq_ref[0], gamma, beta)     # (TQ, D)  query rows of this tile
    xkv = _layernorm_f32(xkv_ref[0], gamma, beta)   # (N,  D)  full sequence (for K/V)
    tq, d = xq.shape
    n = xkv.shape[0]

    xq_b = jnp.broadcast_to(xq.astype(jnp.bfloat16)[None], (heads, tq, d))
    xkv_b = jnp.broadcast_to(xkv.astype(jnp.bfloat16)[None], (heads, n, d))

    # --- Q/K/V projections: one batched-over-heads MXU contraction each.
    #     `scale` is already folded into wq.  bf16 x bf16 -> f32 accumulate. ---
    q = jnp.einsum("hqd,hdf->hqf", xq_b, wq_ref[...],
                   preferred_element_type=jnp.float32)    # (H, TQ, dh)
    k = jnp.einsum("hkd,hdf->hkf", xkv_b, wk_ref[...],
                   preferred_element_type=jnp.float32)    # (H, N, dh)
    v = jnp.einsum("hkd,hdf->hkf", xkv_b, wv_ref[...],
                   preferred_element_type=jnp.float32)    # (H, N, dh)

    # --- Scaled dot-product attention; softmax stats in f32 ---
    s = jnp.einsum("hqf,hkf->hqk", q.astype(jnp.bfloat16), k.astype(jnp.bfloat16),
                   preferred_element_type=jnp.float32)    # (H, TQ, N)
    s = s - jnp.max(s, axis=-1, keepdims=True)
    p = jnp.exp(s)
    p = p * pl.reciprocal(jnp.sum(p, axis=-1, keepdims=True), approx=True)

    o = jnp.einsum("hqk,hkf->hqf", p.astype(jnp.bfloat16), v.astype(jnp.bfloat16),
                   preferred_element_type=jnp.float32)    # (H, TQ, dh)

    # --- Output projection with per-head (dh, D) weight slabs, summed over heads.
    #     Mathematically identical to concat(heads) @ W_out, with no lane concatenate. ---
    y = jnp.einsum("hqf,hfe->hqe", o.astype(jnp.bfloat16), wo_ref[...],
                   preferred_element_type=jnp.float32)    # (H, TQ, D)
    y = jnp.sum(y, axis=0) + bo_ref[0].astype(jnp.float32)

    # NOTE: for D < 128 (toy config) this store is lane-masked; real ViT dims (>=768)
    # are lane-dense.
    o_ref[0] = y.astype(o_ref.dtype)


def _pick_tile_q(n, max_tile=256):
    """Largest query tile <= max_tile that divides N (multiple of 8), else N itself."""
    if n <= max_tile:
        return n
    for t in range(max_tile, 0, -8):
        if n % t == 0:
            return t
    return n


def attention_forward(x, params, *, heads, dim_head):
    """x: (B, N, D) float32.  params: dict of weights (see init_params)."""
    B, N, D = x.shape
    inner = heads * dim_head
    scale = dim_head ** -0.5
    tile_q = _pick_tile_q(N)
    n_qt = N // tile_q

    # Host-side weight prep (free): split QKV per head, fold `scale` into W_q,
    # store matmul operands in bf16 (halves weight DMA bytes and VMEM footprint).
    w_qkv = params["w_qkv"].astype(jnp.float32)                      # (D, 3*inner)
    w_q = (w_qkv[:, 0 * inner:1 * inner] * scale).reshape(D, heads, dim_head)
    w_k = w_qkv[:, 1 * inner:2 * inner].reshape(D, heads, dim_head)
    w_v = w_qkv[:, 2 * inner:3 * inner].reshape(D, heads, dim_head)
    w_q3 = jnp.transpose(w_q, (1, 0, 2)).astype(jnp.bfloat16)        # (H, D, dh)
    w_k3 = jnp.transpose(w_k, (1, 0, 2)).astype(jnp.bfloat16)        # (H, D, dh)
    w_v3 = jnp.transpose(w_v, (1, 0, 2)).astype(jnp.bfloat16)        # (H, D, dh)
    w_o3 = params["w_out"].reshape(heads, dim_head, D).astype(jnp.bfloat16)  # (H, dh, D)

    gamma = params["ln_gamma"].reshape(1, D).astype(jnp.float32)
    beta = params["ln_beta"].reshape(1, D).astype(jnp.float32)
    b_out = params["b_out"].reshape(1, D).astype(jnp.float32)

    kernel = functools.partial(_attention_kernel, heads=heads)

    # VMEM budget derived from actual block sizes (double-buffered) plus headroom for
    # in-kernel intermediates; clamped so it stays within the default scoped limit on
    # every TPU generation (v5e/v6e 128 MiB physical, v7x 64 MiB physical).
    blk_bytes = (
        2 * (tile_q * D * 4 + N * D * 4 + tile_q * D * 4)        # xq, xkv, out blocks
        + 2 * (3 * heads * D * dim_head * 2 + inner * D * 2)     # bf16 weight blocks
        + 2 * 3 * D * 4                                          # gamma / beta / bias
    )
    interm_bytes = 3 * heads * tile_q * N * 4 + 3 * heads * N * dim_head * 4
    vmem_limit = int(min(32 * 1024 * 1024,
                         max(8 * 1024 * 1024, 2 * (blk_bytes + interm_bytes))))

    return pl.pallas_call(
        kernel,
        out_shape=jax.ShapeDtypeStruct((B, N, D), x.dtype),
        grid_spec=pltpu.PrefetchScalarGridSpec(
            num_scalar_prefetch=0,
            grid=(B, n_qt),
            in_specs=[
                pl.BlockSpec((1, tile_q, D), lambda b, q: (b, q, 0)),        # x (query tile)
                pl.BlockSpec((1, N, D), lambda b, q: (b, 0, 0)),             # x (full seq, K/V)
                pl.BlockSpec((1, D), lambda b, q: (0, 0)),                   # ln gamma
                pl.BlockSpec((1, D), lambda b, q: (0, 0)),                   # ln beta
                pl.BlockSpec((heads, D, dim_head), lambda b, q: (0, 0, 0)),  # W_q (pre-scaled)
                pl.BlockSpec((heads, D, dim_head), lambda b, q: (0, 0, 0)),  # W_k
                pl.BlockSpec((heads, D, dim_head), lambda b, q: (0, 0, 0)),  # W_v
                pl.BlockSpec((heads, dim_head, D), lambda b, q: (0, 0, 0)),  # W_out
                pl.BlockSpec((1, D), lambda b, q: (0, 0)),                   # b_out
            ],
            out_specs=pl.BlockSpec((1, tile_q, D), lambda b, q: (b, q, 0)),
        ),
        compiler_params=pltpu.CompilerParams(
            dimension_semantics=("parallel", "parallel"),
            vmem_limit_bytes=vmem_limit),
    )(x, x, gamma, beta, w_q3, w_k3, w_v3, w_o3, b_out)


def init_params(key, dim, heads, dim_head):
    inner = heads * dim_head
    k1, k2, k3 = jax.random.split(key, 3)
    return {
        "ln_gamma": jnp.ones((dim,), jnp.float32),
        "ln_beta": jnp.zeros((dim,), jnp.float32),
        "w_qkv": jax.random.normal(k1, (dim, 3 * inner), jnp.float32) * 0.05,
        "w_out": jax.random.normal(k2, (inner, dim), jnp.float32) * 0.05,
        "b_out": jax.random.normal(k3, (dim,), jnp.float32) * 0.01,
    }


def attention_reference(x, params, *, heads, dim_head):
    """Pure-JAX (f32) reference mirroring the PyTorch forward (dropout=0)."""
    B, N, D = x.shape
    inner = heads * dim_head
    scale = dim_head ** -0.5
    mean = jnp.mean(x, axis=-1, keepdims=True)
    var = jnp.mean((x - mean) ** 2, axis=-1, keepdims=True)
    xn = (x - mean) / jnp.sqrt(var + LN_EPS) * params["ln_gamma"] + params["ln_beta"]
    qkv = xn @ params["w_qkv"]                               # (B, N, 3*inner)
    q, k, v = jnp.split(qkv, 3, axis=-1)
    def split_heads(t):                                      # b n (h d) -> b h n d
        return t.reshape(B, N, heads, dim_head).transpose(0, 2, 1, 3)
    q, k, v = map(split_heads, (q, k, v))
    dots = jnp.einsum("bhnd,bhmd->bhnm", q, k) * scale
    attn = jax.nn.softmax(dots, axis=-1)
    out = jnp.einsum("bhnm,bhmd->bhnd", attn, v)
    out = out.transpose(0, 2, 1, 3).reshape(B, N, inner)     # b h n d -> b n (h d)
    return out @ params["w_out"] + params["b_out"]


if __name__ == "__main__":
    # Small shapes consistent with the module: batch=2, seq=16, dim=32, heads=4, dim_head=16.
    B, N, D = 2, 16, 32
    heads, dim_head = 4, 16

    key = jax.random.PRNGKey(0)
    kx, kp = jax.random.split(key)
    x = jax.random.normal(kx, (B, N, D), jnp.float32)
    params = init_params(kp, D, heads, dim_head)

    y = attention_forward(x, params, heads=heads, dim_head=dim_head)
    y = jax.block_until_ready(y)

    y_ref = attention_reference(x, params, heads=heads, dim_head=dim_head)
    assert y.shape == (B, N, D)
    max_err = float(jnp.max(jnp.abs(y - y_ref)))
    # bf16 MXU operands + approx reciprocal => looser tolerance than the pure-f32 reference.
    assert jnp.allclose(y, y_ref, atol=2e-2, rtol=2e-2), f"mismatch vs reference (max abs err {max_err})"

    print("KERNEL_OK")
</pallas_src>

<mosaic_0001>
module attributes {stable_mosaic.version = 11 : i64} {
  func.func @_attention_kernel(%arg0: i32, %arg1: i32, %arg2: memref<1x16x32xf32, #tpu.memory_space<vmem>>, %arg3: memref<1x16x32xf32, #tpu.memory_space<vmem>>, %arg4: memref<1x32xf32, #tpu.memory_space<vmem>>, %arg5: memref<1x32xf32, #tpu.memory_space<vmem>>, %arg6: memref<4x32x16xbf16, #tpu.memory_space<vmem>>, %arg7: memref<4x32x16xbf16, #tpu.memory_space<vmem>>, %arg8: memref<4x32x16xbf16, #tpu.memory_space<vmem>>, %arg9: memref<4x16x32xbf16, #tpu.memory_space<vmem>>, %arg10: memref<1x32xf32, #tpu.memory_space<vmem>>, %arg11: memref<1x16x32xf32, #tpu.memory_space<vmem>>) attributes {dimension_semantics = [#tpu.dimension_semantics<parallel>, #tpu.dimension_semantics<parallel>], iteration_bounds = array<i64: 2, 1>, scalar_prefetch = 0 : i64, scratch_operands = 0 : i64, tpu.core_type = #tpu.core_type<tc>, window_params = [{transform_indices = @transform_0, window_bounds = array<i64: 1, 16, 32>}, {transform_indices = @transform_1, window_bounds = array<i64: 1, 16, 32>}, {pipeline_mode = #tpu.pipeline_mode<synchronous>, transform_indices = @transform_2, window_bounds = array<i64: 1, 32>}, {pipeline_mode = #tpu.pipeline_mode<synchronous>, transform_indices = @transform_3, window_bounds = array<i64: 1, 32>}, {pipeline_mode = #tpu.pipeline_mode<synchronous>, transform_indices = @transform_4, window_bounds = array<i64: 4, 32, 16>}, {pipeline_mode = #tpu.pipeline_mode<synchronous>, transform_indices = @transform_5, window_bounds = array<i64: 4, 32, 16>}, {pipeline_mode = #tpu.pipeline_mode<synchronous>, transform_indices = @transform_6, window_bounds = array<i64: 4, 32, 16>}, {pipeline_mode = #tpu.pipeline_mode<synchronous>, transform_indices = @transform_7, window_bounds = array<i64: 4, 16, 32>}, {pipeline_mode = #tpu.pipeline_mode<synchronous>, transform_indices = @transform_8, window_bounds = array<i64: 1, 32>}, {transform_indices = @transform_9, window_bounds = array<i64: 1, 16, 32>}]} {
    %c0 = arith.constant 0 : index
    %c0_0 = arith.constant 0 : index
    %0 = vector.load %arg4[%c0, %c0_0] : memref<1x32xf32, #tpu.memory_space<vmem>>, vector<1x32xf32>
    %1 = vector.shape_cast %0 : vector<1x32xf32> to vector<32xf32>
    %c0_1 = arith.constant 0 : index
    %c0_2 = arith.constant 0 : index
    %2 = vector.load %arg5[%c0_1, %c0_2] : memref<1x32xf32, #tpu.memory_space<vmem>>, vector<1x32xf32>
    %3 = vector.shape_cast %2 : vector<1x32xf32> to vector<32xf32>
    %c0_3 = arith.constant 0 : index
    %c0_4 = arith.constant 0 : index
    %c0_5 = arith.constant 0 : index
    %4 = vector.load %arg2[%c0_3, %c0_4, %c0_5] : memref<1x16x32xf32, #tpu.memory_space<vmem>>, vector<1x16x32xf32>
    %5 = vector.shape_cast %4 : vector<1x16x32xf32> to vector<16x32xf32>
    %cst = arith.constant dense<0.000000e+00> : vector<16xf32>
    %6 = vector.multi_reduction <add>, %5, %cst [1] : vector<16x32xf32> to vector<16xf32>
    %7 = vector.shape_cast %6 : vector<16xf32> to vector<16x1xf32>
    %cst_6 = arith.constant 3.200000e+01 : f32
    %8 = vector.broadcast %cst_6 : f32 to vector<16x1xf32>
    %9 = arith.divf %7, %8 : vector<16x1xf32>
    %10 = vector.broadcast %9 : vector<16x1xf32> to vector<16x32xf32>
    %11 = arith.subf %5, %10 : vector<16x32xf32>
    %12 = vector.broadcast %9 : vector<16x1xf32> to vector<16x32xf32>
    %13 = arith.subf %5, %12 : vector<16x32xf32>
    %14 = arith.mulf %11, %13 : vector<16x32xf32>
    %cst_7 = arith.constant dense<0.000000e+00> : vector<16xf32>
    %15 = vector.multi_reduction <add>, %14, %cst_7 [1] : vector<16x32xf32> to vector<16xf32>
    %16 = vector.shape_cast %15 : vector<16xf32> to vector<16x1xf32>
    %cst_8 = arith.constant 3.200000e+01 : f32
    %17 = vector.broadcast %cst_8 : f32 to vector<16x1xf32>
    %18 = arith.divf %16, %17 : vector<16x1xf32>
    %19 = vector.broadcast %9 : vector<16x1xf32> to vector<16x32xf32>
    %20 = arith.subf %5, %19 : vector<16x32xf32>
    %cst_9 = arith.constant 9.99999974E-6 : f32
    %21 = vector.broadcast %cst_9 : f32 to vector<16x1xf32>
    %22 = arith.addf %18, %21 : vector<16x1xf32>
    %23 = math.rsqrt %22 : vector<16x1xf32>
    %24 = vector.broadcast %23 : vector<16x1xf32> to vector<16x32xf32>
    %25 = arith.mulf %20, %24 : vector<16x32xf32>
    %26 = vector.shape_cast %1 : vector<32xf32> to vector<1x32xf32>
    %27 = vector.broadcast %26 : vector<1x32xf32> to vector<16x32xf32>
    %28 = arith.mulf %25, %27 : vector<16x32xf32>
    %29 = vector.shape_cast %3 : vector<32xf32> to vector<1x32xf32>
    %30 = vector.broadcast %29 : vector<1x32xf32> to vector<16x32xf32>
    %31 = arith.addf %28, %30 : vector<16x32xf32>
    %c0_10 = arith.constant 0 : index
    %c0_11 = arith.constant 0 : index
    %c0_12 = arith.constant 0 : index
    %32 = vector.load %arg3[%c0_10, %c0_11, %c0_12] : memref<1x16x32xf32, #tpu.memory_space<vmem>>, vector<1x16x32xf32>
    %33 = vector.shape_cast %32 : vector<1x16x32xf32> to vector<16x32xf32>
    %cst_13 = arith.constant dense<0.000000e+00> : vector<16xf32>
    %34 = vector.multi_reduction <add>, %33, %cst_13 [1] : vector<16x32xf32> to vector<16xf32>
    %35 = vector.shape_cast %34 : vector<16xf32> to vector<16x1xf32>
    %cst_14 = arith.constant 3.200000e+01 : f32
    %36 = vector.broadcast %cst_14 : f32 to vector<16x1xf32>
    %37 = arith.divf %35, %36 : vector<16x1xf32>
    %38 = vector.broadcast %37 : vector<16x1xf32> to vector<16x32xf32>
    %39 = arith.subf %33, %38 : vector<16x32xf32>
    %40 = vector.broadcast %37 : vector<16x1xf32> to vector<16x32xf32>
    %41 = arith.subf %33, %40 : vector<16x32xf32>
    %42 = arith.mulf %39, %41 : vector<16x32xf32>
    %cst_15 = arith.constant dense<0.000000e+00> : vector<16xf32>
    %43 = vector.multi_reduction <add>, %42, %cst_15 [1] : vector<16x32xf32> to vector<16xf32>
    %44 = vector.shape_cast %43 : vector<16xf32> to vector<16x1xf32>
    %cst_16 = arith.constant 3.200000e+01 : f32
    %45 = vector.broadcast %cst_16 : f32 to vector<16x1xf32>
    %46 = arith.divf %44, %45 : vector<16x1xf32>
    %47 = vector.broadcast %37 : vector<16x1xf32> to vector<16x32xf32>
    %48 = arith.subf %33, %47 : vector<16x32xf32>
    %cst_17 = arith.constant 9.99999974E-6 : f32
    %49 = vector.broadcast %cst_17 : f32 to vector<16x1xf32>
    %50 = arith.addf %46, %49 : vector<16x1xf32>
    %51 = math.rsqrt %50 : vector<16x1xf32>
    %52 = vector.broadcast %51 : vector<16x1xf32> to vector<16x32xf32>
    %53 = arith.mulf %48, %52 : vector<16x32xf32>
    %54 = vector.shape_cast %1 : vector<32xf32> to vector<1x32xf32>
    %55 = vector.broadcast %54 : vector<1x32xf32> to vector<16x32xf32>
    %56 = arith.mulf %53, %55 : vector<16x32xf32>
    %57 = vector.shape_cast %3 : vector<32xf32> to vector<1x32xf32>
    %58 = vector.broadcast %57 : vector<1x32xf32> to vector<16x32xf32>
    %59 = arith.addf %56, %58 : vector<16x32xf32>
    %60 = arith.truncf %31 : vector<16x32xf32> to vector<16x32xbf16>
    %61 = vector.shape_cast %60 : vector<16x32xbf16> to vector<1x16x32xbf16>
    %62 = vector.shape_cast %61 : vector<1x16x32xbf16> to vector<1x16x32xbf16>
    %63 = vector.broadcast %62 : vector<1x16x32xbf16> to vector<4x16x32xbf16>
    %64 = arith.truncf %59 : vector<16x32xf32> to vector<16x32xbf16>
    %65 = vector.shape_cast %64 : vector<16x32xbf16> to vector<1x16x32xbf16>
    %66 = vector.shape_cast %65 : vector<1x16x32xbf16> to vector<1x16x32xbf16>
    %67 = vector.broadcast %66 : vector<1x16x32xbf16> to vector<4x16x32xbf16>
    %c0_18 = arith.constant 0 : index
    %c0_19 = arith.constant 0 : index
    %c0_20 = arith.constant 0 : index
    %68 = vector.load %arg6[%c0_18, %c0_19, %c0_20] : memref<4x32x16xbf16, #tpu.memory_space<vmem>>, vector<4x32x16xbf16>
    "tpu.trace_start"() <{level = 10 : i32, message = "hqd,hdf->hqf"}> : () -> ()
    %cst_21 = arith.constant dense<0.000000e+00> : vector<4x16x16xf32>
    %69 = tpu.matmul %63, %68, %cst_21 {dimension_numbers = #tpu.dot_dimension_numbers<[2], [1], [1], [2], [0, 0, 0, 1, 1, 2], [0], [0]>} : vector<4x16x32xbf16>, vector<4x32x16xbf16>, vector<4x16x16xf32> -> vector<4x16x16xf32>
    "tpu.trace_stop"() : () -> ()
    %c0_22 = arith.constant 0 : index
    %c0_23 = arith.constant 0 : index
    %c0_24 = arith.constant 0 : index
    %70 = vector.load %arg7[%c0_22, %c0_23, %c0_24] : memref<4x32x16xbf16, #tpu.memory_space<vmem>>, vector<4x32x16xbf16>
    "tpu.trace_start"() <{level = 10 : i32, message = "hkd,hdf->hkf"}> : () -> ()
    %cst_25 = arith.constant dense<0.000000e+00> : vector<4x16x16xf32>
    %71 = tpu.matmul %67, %70, %cst_25 {dimension_numbers = #tpu.dot_dimension_numbers<[2], [1], [1], [2], [0, 0, 0, 1, 1, 2], [0], [0]>} : vector<4x16x32xbf16>, vector<4x32x16xbf16>, vector<4x16x16xf32> -> vector<4x16x16xf32>
    "tpu.trace_stop"() : () -> ()
    %c0_26 = arith.constant 0 : index
    %c0_27 = arith.constant 0 : index
    %c0_28 = arith.constant 0 : index
    %72 = vector.load %arg8[%c0_26, %c0_27, %c0_28] : memref<4x32x16xbf16, #tpu.memory_space<vmem>>, vector<4x32x16xbf16>
    "tpu.trace_start"() <{level = 10 : i32, message = "hkd,hdf->hkf"}> : () -> ()
    %cst_29 = arith.constant dense<0.000000e+00> : vector<4x16x16xf32>
    %73 = tpu.matmul %67, %72, %cst_29 {dimension_numbers = #tpu.dot_dimension_numbers<[2], [1], [1], [2], [0, 0, 0, 1, 1, 2], [0], [0]>} : vector<4x16x32xbf16>, vector<4x32x16xbf16>, vector<4x16x16xf32> -> vector<4x16x16xf32>
    "tpu.trace_stop"() : () -> ()
    %74 = arith.truncf %69 : vector<4x16x16xf32> to vector<4x16x16xbf16>
    %75 = arith.truncf %71 : vector<4x16x16xf32> to vector<4x16x16xbf16>
    "tpu.trace_start"() <{level = 10 : i32, message = "hqf,hkf->hqk"}> : () -> ()
    %cst_30 = arith.constant dense<0.000000e+00> : vector<4x16x16xf32>
    %76 = tpu.matmul %74, %75, %cst_30 {dimension_numbers = #tpu.dot_dimension_numbers<[2], [2], [1], [1], [0, 0, 0, 1, 1, 1], [0], [0]>} : vector<4x16x16xbf16>, vector<4x16x16xbf16>, vector<4x16x16xf32> -> vector<4x16x16xf32>
    "tpu.trace_stop"() : () -> ()
    %cst_31 = arith.constant dense<0xFF800000> : vector<4x16xf32>
    %77 = vector.multi_reduction <maximumf>, %76, %cst_31 [2] : vector<4x16x16xf32> to vector<4x16xf32>
    %78 = vector.shape_cast %77 : vector<4x16xf32> to vector<4x16x1xf32>
    %79 = vector.broadcast %78 : vector<4x16x1xf32> to vector<4x16x16xf32>
    %80 = arith.subf %76, %79 : vector<4x16x16xf32>
    %81 = math.exp %80 : vector<4x16x16xf32>
    %cst_32 = arith.constant dense<0.000000e+00> : vector<4x16xf32>
    %82 = vector.multi_reduction <add>, %81, %cst_32 [2] : vector<4x16x16xf32> to vector<4x16xf32>
    %83 = vector.shape_cast %82 : vector<4x16xf32> to vector<4x16x1xf32>
    %84 = tpu.reciprocal %83 {approx = true} : vector<4x16x1xf32> -> vector<4x16x1xf32>
    %85 = vector.broadcast %84 : vector<4x16x1xf32> to vector<4x16x16xf32>
    %86 = arith.mulf %81, %85 : vector<4x16x16xf32>
    %87 = arith.truncf %86 : vector<4x16x16xf32> to vector<4x16x16xbf16>
    %88 = arith.truncf %73 : vector<4x16x16xf32> to vector<4x16x16xbf16>
    "tpu.trace_start"() <{level = 10 : i32, message = "hqk,hkf->hqf"}> : () -> ()
    %cst_33 = arith.constant dense<0.000000e+00> : vector<4x16x16xf32>
    %89 = tpu.matmul %87, %88, %cst_33 {dimension_numbers = #tpu.dot_dimension_numbers<[2], [1], [1], [2], [0, 0, 0, 1, 1, 2], [0], [0]>} : vector<4x16x16xbf16>, vector<4x16x16xbf16>, vector<4x16x16xf32> -> vector<4x16x16xf32>
    "tpu.trace_stop"() : () -> ()
    %90 = arith.truncf %89 : vector<4x16x16xf32> to vector<4x16x16xbf16>
    %c0_34 = arith.constant 0 : index
    %c0_35 = arith.constant 0 : index
    %c0_36 = arith.constant 0 : index
    %91 = vector.load %arg9[%c0_34, %c0_35, %c0_36] : memref<4x16x32xbf16, #tpu.memory_space<vmem>>, vector<4x16x32xbf16>
    "tpu.trace_start"() <{level = 10 : i32, message = "hqf,hfe->hqe"}> : () -> ()
    %cst_37 = arith.constant dense<0.000000e+00> : vector<4x16x32xf32>
    %92 = tpu.matmul %90, %91, %cst_37 {dimension_numbers = #tpu.dot_dimension_numbers<[2], [1], [1], [2], [0, 0, 0, 1, 1, 2], [0], [0]>} : vector<4x16x16xbf16>, vector<4x16x32xbf16>, vector<4x16x32xf32> -> vector<4x16x32xf32>
    "tpu.trace_stop"() : () -> ()
    %cst_38 = arith.constant dense<0.000000e+00> : vector<16x32xf32>
    %93 = vector.multi_reduction <add>, %92, %cst_38 [0] : vector<4x16x32xf32> to vector<16x32xf32>
    %c0_39 = arith.constant 0 : index
    %c0_40 = arith.constant 0 : index
    %94 = vector.load %arg10[%c0_39, %c0_40] : memref<1x32xf32, #tpu.memory_space<vmem>>, vector<1x32xf32>
    %95 = vector.shape_cast %94 : vector<1x32xf32> to vector<32xf32>
    %96 = vector.shape_cast %95 : vector<32xf32> to vector<1x32xf32>
    %97 = vector.broadcast %96 : vector<1x32xf32> to vector<16x32xf32>
    %98 = arith.addf %93, %97 : vector<16x32xf32>
    %c0_41 = arith.constant 0 : index
    %c0_42 = arith.constant 0 : index
    %c0_43 = arith.constant 0 : index
    %99 = vector.load %arg11[%c0_41, %c0_42, %c0_43] : memref<1x16x32xf32, #tpu.memory_space<vmem>>, vector<1x16x32xf32>
    %100 = vector.shape_cast %99 : vector<1x16x32xf32> to vector<16x32xf32>
    %101 = vector.shape_cast %98 : vector<16x32xf32> to vector<1x16x32xf32>
    tpu.vector_store %arg11[%c0_41, %c0_42, %c0_43], %101 {strides = array<i32>} : memref<1x16x32xf32, #tpu.memory_space<vmem>>, vector<1x16x32xf32>,
    return
  }
  func.func @transform_0(%arg0: i32, %arg1: i32) -> (i32, i32, i32) {
    %c0_i32 = arith.constant 0 : i32
    %c0_i32_0 = arith.constant 0 : i32
    return %arg0, %arg1, %c0_i32 : i32, i32, i32
  }
  func.func @transform_1(%arg0: i32, %arg1: i32) -> (i32, i32, i32) {
    %c0_i32 = arith.constant 0 : i32
    %c0_i32_0 = arith.constant 0 : i32
    %c0_i32_1 = arith.constant 0 : i32
    return %arg0, %c0_i32, %c0_i32_0 : i32, i32, i32
  }
  func.func @transform_2(%arg0: i32, %arg1: i32) -> (i32, i32) {
    %c0_i32 = arith.constant 0 : i32
    %c0_i32_0 = arith.constant 0 : i32
    %c0_i32_1 = arith.constant 0 : i32
    return %c0_i32, %c0_i32_0 : i32, i32
  }
  func.func @transform_3(%arg0: i32, %arg1: i32) -> (i32, i32) {
    %c0_i32 = arith.constant 0 : i32
    %c0_i32_0 = arith.constant 0 : i32
    %c0_i32_1 = arith.constant 0 : i32
    return %c0_i32, %c0_i32_0 : i32, i32
  }
  func.func @transform_4(%arg0: i32, %arg1: i32) -> (i32, i32, i32) {
    %c0_i32 = arith.constant 0 : i32
    %c0_i32_0 = arith.constant 0 : i32
    %c0_i32_1 = arith.constant 0 : i32
    %c0_i32_2 = arith.constant 0 : i32
    return %c0_i32, %c0_i32_0, %c0_i32_1 : i32, i32, i32
  }
  func.func @transform_5(%arg0: i32, %arg1: i32) -> (i32, i32, i32) {
    %c0_i32 = arith.constant 0 : i32
    %c0_i32_0 = arith.constant 0 : i32
    %c0_i32_1 = arith.constant 0 : i32
    %c0_i32_2 = arith.constant 0 : i32
    return %c0_i32, %c0_i32_0, %c0_i32_1 : i32, i32, i32
  }
  func.func @transform_6(%arg0: i32, %arg1: i32) -> (i32, i32, i32) {
    %c0_i32 = arith.constant 0 : i32
    %c0_i32_0 = arith.constant 0 : i32
    %c0_i32_1 = arith.constant 0 : i32
    %c0_i32_2 = arith.constant 0 : i32
    return %c0_i32, %c0_i32_0, %c0_i32_1 : i32, i32, i32
  }
  func.func @transform_7(%arg0: i32, %arg1: i32) -> (i32, i32, i32) {
    %c0_i32 = arith.constant 0 : i32
    %c0_i32_0 = arith.constant 0 : i32
    %c0_i32_1 = arith.constant 0 : i32
    %c0_i32_2 = arith.constant 0 : i32
    return %c0_i32, %c0_i32_0, %c0_i32_1 : i32, i32, i32
  }
  func.func @transform_8(%arg0: i32, %arg1: i32) -> (i32, i32) {
    %c0_i32 = arith.constant 0 : i32
    %c0_i32_0 = arith.constant 0 : i32
    %c0_i32_1 = arith.constant 0 : i32
    return %c0_i32, %c0_i32_0 : i32, i32
  }
  func.func @transform_9(%arg0: i32, %arg1: i32) -> (i32, i32, i32) {
    %c0_i32 = arith.constant 0 : i32
    %c0_i32_0 = arith.constant 0 : i32
    return %arg0, %arg1, %c0_i32 : i32, i32, i32
  }
}

</mosaic_0001>

<bundles_post_ra>
// kernel: tpu_custom_call.1
= control target key start
LH: loop header
LB: loop body
LE: loop exit
PB: predicated region body
PF: predicated region fallthrough
CT: control target
= control target key end

     0   :  { %14 = vsyncpa [#allocation3], 0  ;;  %s2917_s0 = inlined_call_operand.vmem [shape: f32[2,16,32], index: 0, kind: input, shape index: {}]   ;;  %s2918_s1 = inlined_call_operand.vmem [shape: f32[2,16,32], index: 1, kind: input, shape index: {}]   ;;  %s2919_s2 = inlined_call_operand.vmem [shape: f32[1,32], index: 2, kind: input, shape index: {}]   ;;  %s2920_s3 = inlined_call_operand.vmem [shape: f32[1,32], index: 3, kind: input, shape index: {}]   ;;  %s2921_s4 = inlined_call_operand.vmem [shape: bf16[4,32,16], index: 4, kind: input, shape index: {}]   ;;  %s2922_s5 = inlined_call_operand.vmem [shape: bf16[4,32,16], index: 5, kind: input, shape index: {}]   ;;  %s2923_s6 = inlined_call_operand.vmem [shape: bf16[4,32,16], index: 6, kind: input, shape index: {}]   ;;  %s2924_s7 = inlined_call_operand.vmem [shape: bf16[4,16,32], index: 7, kind: input, shape index: {}]   ;;  %s2925_s8 = inlined_call_operand.vmem [shape: f32[1,32], index: 8, kind: input, shape index: {}]   ;;  %s2926_s9 = inlined_call_operand.hbm [shape: f32[2,16,32], index: 9, kind: output, shape index: {}]  }
   0x1   :  { %16 = vsyncpa [#allocation3 + $0x1], 0  ;;  %s2529_s30 = smov 0   ;;  %s2531_s10 = smov 0  }
   0x2   :  { %s2533_s11 = smov 0   ;;  %s2535_s12 = smov 0  }
   0x3   :  { %s2537_s13 = smov 0   ;;  %s2539_s14 = smov 0  }
   0x4 LB: > { %s1968_s15 = sadd.s32 4294967295, %s2472_s14   ;;  %s1969_s16 = sadd.s32 4294967294, %s2472_s14   ;;  %s2472_s14 = sphi %s2539_s14, %s22_s14   ;;  %s2468_s13 = sphi %s2537_s13, %s2933_s13   ;;  %s2464_s12 = sphi %s2535_s12, %s2932_s12   ;;  %s2460_s11 = sphi %s2533_s11, %s2931_s11   ;;  %s2456_s10 = sphi %s2531_s10, %s2930_s10   ;;  %s2452_s30 = sphi %s2529_s30, %s2929_s30  }
   0x5   : > { %s34_s17 = sadd.s32 1, %s2468_s13  ;;  %s244_s18 = sadd.s32 1, %s2460_s11 }
   0x6   : > { %p36_p0 = scmp.ge.s32.totalorder %s34_s17, 2  ;;  %p254_p1 = scmp.ne.s32.totalorder %s2460_s11, %s2456_s10 }
   0x7   : > { %p255_p2 = scmp.eq.s32.totalorder %s1968_s15, 1  ;;  %p260_p3 = scmp.ne.s32.totalorder %s2456_s10, %s2452_s30 }
   0x8   : > { %s2935_s17 = smov (%p36_p0, %s34_s17), 0  ;;  %p261_p5 = scmp.eq.s32.totalorder %s1969_s16, 1 }
   0x9   : > { %p2569_p4 = por %p255_p2, %p254_p1  ;;  %s239_s20 = ssub.s32 %s2468_s13, %s2935_s17 }
   0xa   : > { %p1972_p6 = scmp.ge.s32.totalorder %s2472_s14, 1  ;;  %p242_p7 = scmp.eq.s32.totalorder %s239_s20, 0 }
   0xb   : > { %p2576_p8 = por %p261_p5, %p260_p3  ;;  %p321_p9 = scmp.lt.s32.totalorder %s2472_s14, 3 }
   0xc   : > { %s2582_s22 = scalar_select %p242_p7, %s2460_s11, %s244_s18  }
   0xd   : > { %p322_p10 = pnand %p1972_p6, %p321_p9 }
   0xe   : > { %p367_p11 = scmp.lt.s32.totalorder (!%p322_p10), %s2464_s12, 1  ;;  %s363_s25 = sand.u32 (!%p322_p10), 1, %s2456_s10  }
   0xf   : > { %325 = sbr.rel (%p322_p10) target bundleno = 1501 (0x5dd), region = 56  ;;  %s1973_s26 = sshll.u32 (!%p322_p10), %s363_s25, 4 }
  0x10   : > { %s2040_s29 = sshll.u32 (!%p322_p10), %s2464_s12, 8 }
  0x14   : > { %s368_s23 = scalar_select %p367_p11, %s2464_s12, 1  ;;  %vm387_vm0 = vcmask 261120   ;;  %v2328_v28 = vld [vmem:[%s2921_s4 + $0x8] sm:$0xff]   ;;  %v2329_v29 = vld [vmem:[%s2921_s4 + $0x18] sm:$0xff]   ;;  %v2474_v30 = vmov 0.0   ;;  %v2330_v31 = vld [vmem:[%s2921_s4] sm:$0xff]  }
  0x15   : > { %2101 = vmatprep.subr.bf16.mxu0 %v2474_v30  ;;  %2109 = vmatprep.subr.bf16.mxu1 %v2474_v30  ;;  %v2331_v32 = vld [vmem:[%s2921_s4 + $0x10] sm:$0xff]   ;;  %vm2475_vm1 = vmmov 0   ;;  %v1978_v47 = vld [vmem:[%s2919_s2] ss:$0 sm:$0xff]  ;;  %v2332_v55 = vld [vmem:[%s2921_s4 + $0x28] sm:$0xff]   ;;  %vm1163_vm2 = vcmask 130048  }
  0x16   : > { %s2038_s24 = sshll.u32 %s368_s23, 4  ;;  %2102 = vmatpush3.bf16.msra.mxu0 %v2328_v28  ;;  %2110 = vmatpush3.bf16.msra.mxu1 %v2329_v29  ;;  %v1979_v51 = vld [vmem:[%s2920_s3] ss:$0 sm:$0xff]  ;;  %v2333_v56 = vld [vmem:[%s2921_s4 + $0x38] sm:$0xff]   ;;  %v2335_v61 = vld [vmem:[%s2921_s4 + $0x30] sm:$0xff]   ;;  %s2865_s23 = scalar_lea.hbm %s2926_s9, %s2040_s29 }
  0x17   : > { %s374_s27 = scalar_lea.vmem %s2917_s0, %s2038_s24  ;;  %s380_s15 = scalar_lea.vmem %s2918_s1, %s2038_s24  ;;  %2103 = vmatprep.subr.bf16.mxu0 %v2474_v30  ;;  %2111 = vmatprep.subr.bf16.mxu1 %v2474_v30  ;;  %v2334_v60 = vld [vmem:[%s2921_s4 + $0x20] sm:$0xff]  }
  0x18   : > { %v385_v0 = vld [vmem:[%s374_s27] sm:$0xff]  ;;  %v386_v2 = vld [vmem:[%s374_s27 + $0x8] sm:$0xff]  ;;  %2105 = vmatprep.mubr.msk.bf16.mxu0 %vm2475_vm1, %v2474_v30  ;;  %2113 = vmatprep.mubr.msk.bf16.mxu1 %vm2475_vm1, %v2474_v30  ;;  %s2872_s12 = scalar_lea.sflag [#allocation3], %s363_s25 }
  0x19   : > { %v431_v1 = vld [vmem:[%s380_s15] sm:$0xff]  ;;  %v388_v3 = vsel %vm387_vm0, %v385_v0, 0.0  ;;  %v432_v5 = vld [vmem:[%s380_s15 + $0x8] sm:$0xff]  ;;  %v391_v6 = vsel %vm387_vm0, %v386_v2, 0.0  ;;  %s365_s15 = scalar_lea.vmem [#allocation2], %s1973_s26  ;;  %s2476_s26 = smov [#allocation2]  }
  0x1a   : > { %v433_v4 = vsel %vm387_vm0, %v431_v1, 0.0  ;;  %389 = vadd.xlane.f32.xlu0 %v388_v3  ;;  %v436_v7 = vsel %vm387_vm0, %v432_v5, 0.0  ;;  %2104 = vmatpush3.bf16.msra.mxu0 %v2330_v31  ;;  %s1877_s16 = sshll.u32 %s365_s15, 4  ;;  %s2400_s27 = sshll.u32 %s2476_s26, 4  ;;  %s2867_s16 = int_to_ptr.vmem [resolvable:$true] %s1877_s16  ;;  %s2401_s27 = int_to_ptr.vmem [resolvable:$false] %s2400_s27 }
  0x1b   : > { %434 = vadd.xlane.f32.xlu1 %v433_v4  ;;  %2112 = vmatpush3.bf16.msra.mxu1 %v2331_v32  ;;  %v2338_v4 = vld [vmem:[%s2922_s5] sm:$0xff]   ;;  %s2396_s24 = scalar_lea.vmem %s2867_s16, 256  ;;  %s2402_s28 = scalar_lea.vmem %s2401_s27, 512 }
  0x1c   : > { %2117 = vmatprep.subr.bf16.mxu0 %v2474_v30  ;;  %2125 = vmatprep.subr.bf16.mxu1 %v2474_v30  ;;  %p2397_p12 = scmp.ne.s32.totalorder %s2867_s16, %s2396_s24  ;;  %p2403_p1 = scmp.lt.s32.totalorder %s2867_s16, %s2401_s27 }
  0x1d   : > { %p2404_p2 = scmp.lt.s32.totalorder %s2402_s28, %s2396_s24 }
  0x1e   : > { %392 = vadd.xlane.f32.xlu0 %v391_v6  ;;  %p2398_p13 = pnand %p2397_p12, %p2569_p4 }
  0x1f   : > { %437 = vadd.xlane.f32.xlu1 %v436_v7  ;;  %p2405_p3 = por %p2404_p2, %p2403_p1 }
  0x20   : > { %p2399_p0 = pneg %p2398_p13 }
  0x22   : > { %p2406_p5 = pnand %p2405_p3, %p2399_p0 }
  0xa3   : > { %v390_v8 = vpop.xlane.xlu0 %389 }
  0xa4   : > { %v435_v9 = vpop.xlane.xlu1 %434  ;;  %v395_v10 = vmul.f32 0.03125, %v390_v8  ;;  %v2340_v8 = vld [vmem:[%s2922_s5 + $0x28] sm:$0xff]  }
  0xa5   : > { %v439_v11 = vmul.f32 0.03125, %v435_v9  ;;  %v2341_v9 = vld [vmem:[%s2922_s5 + $0x38] sm:$0xff]  }
  0xa6   : > { %v397_v12 = vsub.f32 %v385_v0, %v395_v10  ;;  %v2336_v0 = vld [vmem:[%s2922_s5 + $0x8] sm:$0xff]  }
  0xa7   : > { %v2596_v13 = vsub.f32 %v431_v1, %v439_v11  ;;  %v393_v14 = vpop.xlane.xlu0 %392  ;;  %v2337_v1 = vld [vmem:[%s2922_s5 + $0x18] sm:$0xff]   ;;  %v2342_v11 = vld [vmem:[%s2922_s5 + $0x20] sm:$0xff]  }
  0xa8   : > { %v438_v15 = vpop.xlane.xlu1 %437  ;;  %v396_v16 = vmul.f32 0.03125, %v393_v14  ;;  %v399_v18 = vmul.f32 %v397_v12, %v397_v12  ;;  %v2345_v14 = vld [vmem:[%s2923_s6 + $0x18] sm:$0xff]  }
  0xa9   : > { %v440_v17 = vmul.f32 0.03125, %v438_v15  ;;  %v443_v19 = vmul.f32 %v2596_v13, %v2596_v13  ;;  %v2346_v15 = vld [vmem:[%s2923_s6] sm:$0xff]  }
  0xaa   : > { %v398_v20 = vsub.f32 %v386_v2, %v396_v16  ;;  %v401_v22 = vsel %vm387_vm0, %v399_v18, 0.0  ;;  %v2347_v16 = vld [vmem:[%s2923_s6 + $0x10] sm:$0xff]   ;;  %v2349_v18 = vld [vmem:[%s2923_s6 + $0x38] sm:$0xff]  }
  0xab   : > { %v2600_v21 = vsub.f32 %v432_v5, %v440_v17  ;;  %402 = vadd.xlane.f32.xlu0 %v401_v22  ;;  %v445_v23 = vsel %vm387_vm0, %v443_v19, 0.0  ;;  %v2339_v5 = vld [vmem:[%s2922_s5 + $0x10] sm:$0xff]   ;;  %v2348_v17 = vld [vmem:[%s2923_s6 + $0x28] sm:$0xff]   ;;  %v2350_v19 = vld [vmem:[%s2923_s6 + $0x20] sm:$0xff]  }
  0xac   : > { %v400_v24 = vmul.f32 %v398_v20, %v398_v20 }
  0xad   : > { %v444_v25 = vmul.f32 %v2600_v21, %v2600_v21 }
  0xae   : > { %v404_v26 = vsel %vm387_vm0, %v400_v24, 0.0 }
  0xaf   : > { %446 = vadd.xlane.f32.xlu0 %v445_v23  ;;  %405 = vadd.xlane.f32.xlu1 %v404_v26  ;;  %v448_v27 = vsel %vm387_vm0, %v444_v25, 0.0 }
  0xb3   : > { %449 = vadd.xlane.f32.xlu1 %v448_v27 }
 0x134   : > { %v403_v33 = vpop.xlane.xlu0 %402 }
 0x135   : > { %v407_v34 = vmul.f32 0.03125, %v403_v33 }
 0x137   : > { %v409_v35 = vadd.f32 1e-05, %v407_v34 }
 0x138   : > { %v406_v36 = vpop.xlane.xlu1 %405  ;;  %v447_v39 = vpop.xlane.xlu0 %446 }
 0x139   : > { %2356 = vrsqrt.f32 %v409_v35  ;;  %v408_v37 = vmul.f32 0.03125, %v406_v36  ;;  %v451_v42 = vmul.f32 0.03125, %v447_v39 }
 0x13b   : > { %v410_v38 = vadd.f32 1e-05, %v408_v37  ;;  %v453_v44 = vadd.f32 1e-05, %v451_v42 }
 0x13c   : > { %v450_v40 = vpop.xlane.xlu1 %449 }
 0x13d   : > { %2358 = vrsqrt.f32 %v410_v38  ;;  %v452_v41 = vmul.f32 0.03125, %v450_v40 }
 0x13f   : > { %v454_v43 = vadd.f32 1e-05, %v452_v41 }
 0x141   : > { %2360 = vrsqrt.f32 %v454_v43 }
 0x142   : > { %2362 = vrsqrt.f32 %v453_v44 }
 0x146   : > { %v2357_v45 = vpop.eup %2356 }
 0x147   : > { %v413_v46 = vmul.f32 %v2357_v45, %v397_v12  ;;  %v2343_v12 = vld [vmem:[%s2922_s5 + $0x30] sm:$0xff]  }
 0x149   : > { %v421_v50 = vmul.f32 %v1978_v47, %v413_v46 }
 0x14a   : > { %v2359_v48 = vpop.eup %2358 }
 0x14b   : > { %v414_v49 = vmul.f32 %v2359_v48, %v398_v20  ;;  %v429_v53 = vadd.f32 %v1979_v51, %v421_v50  ;;  %v2351_v20 = vld [vmem:[%s2923_s6 + $0x30] sm:$0xff]  }
 0x14d   : > { %v422_v52 = vmul.f32 %v1978_v47, %v414_v49 }
 0x14e   : > { %v2361_v58 = vpop.eup %2360 }
 0x14f   : > { %v430_v54 = vadd.f32 %v1979_v51, %v422_v52  ;;  %v2363_v59 = vpop.eup %2362  ;;  %v458_v62 = vmul.f32 %v2361_v58, %v2600_v21 }
 0x150   : > { %v457_v63 = vmul.f32 %v2363_v59, %v2596_v13  ;;  %v2344_v13 = vld [vmem:[%s2923_s6 + $0x8] sm:$0xff]  }
 0x151   : > { %v463_v57 = vpack.c.bf16 %v430_v54, %v429_v53  ;;  %v460_v2 = vmul.f32 %v1978_v47, %v458_v62 }
 0x152   : > { %v459_v3 = vmul.f32 %v1978_v47, %v457_v63 }
 0x153   : > { %2106 = vmatmul.mubr.msk.bf16.vlgmr.msra.gmra.mxu0 %vm387_vm0, %v463_v57  ;;  %2114 = vmatmul.mubr.msk.bf16.vlgmr.msra.gmra.mxu1 %vm387_vm0, %v463_v57  ;;  %v462_v6 = vadd.f32 %v1979_v51, %v460_v2 }
 0x154   : > { %2118 = vmatpush3.bf16.msra.mxu0 %v2332_v55  ;;  %2126 = vmatpush3.bf16.msra.mxu1 %v2333_v56  ;;  %v461_v7 = vadd.f32 %v1979_v51, %v459_v3 }
 0x155   : > { %2119 = vmatprep.subr.bf16.mxu0 %v2474_v30  ;;  %2127 = vmatprep.subr.bf16.mxu1 %v2474_v30 }
 0x156   : > { %2121 = vmatprep.mubr.msk.bf16.mxu0 %vm2475_vm1, %v2474_v30  ;;  %2129 = vmatprep.mubr.msk.bf16.mxu1 %vm2475_vm1, %v2474_v30  ;;  %v464_v10 = vpack.c.bf16 %v462_v6, %v461_v7 }
 0x158   : > { %2120 = vmatpush3.bf16.msra.mxu0 %v2334_v60  ;;  %2128 = vmatpush3.bf16.msra.mxu1 %v2335_v61 }
 0x159   : > { %2133 = vmatprep.subr.bf16.mxu0 %v2474_v30  ;;  %2141 = vmatprep.subr.bf16.mxu1 %v2474_v30 }
 0x15b   : > { %2122 = vmatmul.mubr.msk.bf16.vlgmr.msra.gmra.mxu0 %vm387_vm0, %v463_v57  ;;  %2130 = vmatmul.mubr.msk.bf16.vlgmr.msra.gmra.mxu1 %vm387_vm0, %v463_v57 }
 0x15c   : > { %2134 = vmatpush3.bf16.msra.mxu0 %v2336_v0  ;;  %2142 = vmatpush3.bf16.msra.mxu1 %v2337_v1 }
 0x15d   : > { %2135 = vmatprep.subr.bf16.mxu0 %v2474_v30  ;;  %2143 = vmatprep.subr.bf16.mxu1 %v2474_v30 }
 0x15e   : > { %2137 = vmatprep.mubr.msk.bf16.mxu0 %vm2475_vm1, %v2474_v30  ;;  %2145 = vmatprep.mubr.msk.bf16.mxu1 %vm2475_vm1, %v2474_v30 }
 0x160   : > { %2136 = vmatpush3.bf16.msra.mxu0 %v2338_v4  ;;  %2144 = vmatpush3.bf16.msra.mxu1 %v2339_v5 }
 0x161   : > { %2149 = vmatprep.subr.bf16.mxu0 %v2474_v30  ;;  %2157 = vmatprep.subr.bf16.mxu1 %v2474_v30 }
 0x163   : > { %2138 = vmatmul.mubr.msk.bf16.vlgmr.msra.gmra.mxu0 %vm387_vm0, %v464_v10  ;;  %2146 = vmatmul.mubr.msk.bf16.vlgmr.msra.gmra.mxu1 %vm387_vm0, %v464_v10 }
 0x164   : > { %2150 = vmatpush3.bf16.msra.mxu0 %v2340_v8  ;;  %2158 = vmatpush3.bf16.msra.mxu1 %v2341_v9 }
 0x165   : > { %2151 = vmatprep.subr.bf16.mxu0 %v2474_v30  ;;  %2159 = vmatprep.subr.bf16.mxu1 %v2474_v30 }
 0x166   : > { %2153 = vmatprep.mubr.msk.bf16.mxu0 %vm2475_vm1, %v2474_v30  ;;  %2161 = vmatprep.mubr.msk.bf16.mxu1 %vm2475_vm1, %v2474_v30 }
 0x168   : > { %2152 = vmatpush3.bf16.msra.mxu0 %v2342_v11  ;;  %2160 = vmatpush3.bf16.msra.mxu1 %v2343_v12 }
 0x169   : > { %2165 = vmatprep.subr.bf16.mxu0 %v2474_v30  ;;  %2173 = vmatprep.subr.bf16.mxu1 %v2474_v30 }
 0x16b   : > { %2154 = vmatmul.mubr.msk.bf16.vlgmr.msra.gmra.mxu0 %vm387_vm0, %v464_v10  ;;  %2162 = vmatmul.mubr.msk.bf16.vlgmr.msra.gmra.mxu1 %vm387_vm0, %v464_v10 }
 0x16c   : > { %2166 = vmatpush3.bf16.msra.mxu0 %v2344_v13  ;;  %2174 = vmatpush3.bf16.msra.mxu1 %v2345_v14 }
 0x16d   : > { %2167 = vmatprep.subr.bf16.mxu0 %v2474_v30  ;;  %2175 = vmatprep.subr.bf16.mxu1 %v2474_v30 }
 0x16e   : > { %2169 = vmatprep.mubr.msk.bf16.mxu0 %vm2475_vm1, %v2474_v30  ;;  %2177 = vmatprep.mubr.msk.bf16.mxu1 %vm2475_vm1, %v2474_v30 }
 0x170   : > { %2168 = vmatpush3.bf16.msra.mxu0 %v2346_v15  ;;  %2176 = vmatpush3.bf16.msra.mxu1 %v2347_v16 }
 0x171   : > { %2181 = vmatprep.subr.bf16.mxu0 %v2474_v30  ;;  %2189 = vmatprep.subr.bf16.mxu1 %v2474_v30 }
 0x173   : > { %2170 = vmatmul.mubr.msk.bf16.vlgmr.msra.gmra.mxu0 %vm387_vm0, %v464_v10  ;;  %2178 = vmatmul.mubr.msk.bf16.vlgmr.msra.gmra.mxu1 %vm387_vm0, %v464_v10 }
 0x174   : > { %2182 = vmatpush3.bf16.msra.mxu0 %v2348_v17  ;;  %2190 = vmatpush3.bf16.msra.mxu1 %v2349_v18 }
 0x175   : > { %2183 = vmatprep.subr.bf16.mxu0 %v2474_v30  ;;  %2191 = vmatprep.subr.bf16.mxu1 %v2474_v30 }
 0x176   : > { %2185 = vmatprep.mubr.msk.bf16.mxu0 %vm2475_vm1, %v2474_v30  ;;  %2193 = vmatprep.mubr.msk.bf16.mxu1 %vm2475_vm1, %v2474_v30 }
 0x178   : > { %2184 = vmatpush3.bf16.msra.mxu0 %v2350_v19  ;;  %2192 = vmatpush3.bf16.msra.mxu1 %v2351_v20 }
 0x179   : > { %2197 = vmatprep.subr.bf16.mxu0 %v2474_v30  ;;  %2203 = vmatprep.subr.bf16.mxu1 %v2474_v30 }
 0x17b   : > { %2186 = vmatmul.mubr.msk.bf16.vlgmr.msra.gmra.mxu0 %vm387_vm0, %v464_v10  ;;  %2194 = vmatmul.mubr.msk.bf16.vlgmr.msra.gmra.mxu1 %vm387_vm0, %v464_v10 }
 0x17c   : > { %2199 = vmatprep.mubr.msk.bf16.mxu0 %vm2475_vm1, %v2474_v30  ;;  %2205 = vmatprep.mubr.msk.bf16.mxu1 %vm2475_vm1, %v2474_v30 }
 0x213   : > { %v530_v21 = vpop.f32.mrf.mxu0  ;;  %v583_v22 = vpop.f32.mrf.mxu1 }
 0x215   : > { %v2107_v23 = vpop.f32.mrf.mxu0  ;;  %v2115_v24 = vpop.f32.mrf.mxu1 }
 0x217   : > { %v533_v25 = vpop.f32.mrf.mxu0  ;;  %v586_v26 = vpop.f32.mrf.mxu1 }
 0x218   : > { %v1155_v56 = vpack.c.bf16 %v533_v25, %v530_v21  ;;  %v1156_v57 = vpack.c.bf16 %v586_v26, %v583_v22 }
 0x219   : > { %v2108_v27 = vpop.f32.mrf.mxu0  ;;  %v2116_v28 = vpop.f32.mrf.mxu1 }
 0x21b   : > { %v636_v29 = vpop.f32.mrf.mxu0  ;;  %v689_v31 = vpop.f32.mrf.mxu1 }
 0x21d   : > { %v2123_v32 = vpop.f32.mrf.mxu0  ;;  %v2131_v33 = vpop.f32.mrf.mxu1 }
 0x21f   : > { %v639_v34 = vpop.f32.mrf.mxu0  ;;  %v692_v35 = vpop.f32.mrf.mxu1 }
 0x220   : > { %v1157_v6 = vpack.c.bf16 %v639_v34, %v636_v29  ;;  %v1158_v7 = vpack.c.bf16 %v692_v35, %v689_v31 }
 0x221   : > { %v2124_v36 = vpop.f32.mrf.mxu0  ;;  %v2132_v37 = vpop.f32.mrf.mxu1 }
 0x223   : > { %v761_v38 = vpop.f32.mrf.mxu0  ;;  %v814_v39 = vpop.f32.mrf.mxu1 }
 0x225   : > { %v2139_v40 = vpop.f32.mrf.mxu0  ;;  %v2147_v41 = vpop.f32.mrf.mxu1 }
 0x227   : > { %v764_v42 = vpop.f32.mrf.mxu0  ;;  %v817_v43 = vpop.f32.mrf.mxu1 }
 0x228   : > { %v1159_v44 = vpack.c.bf16 %v764_v42, %v761_v38  ;;  %v1160_v45 = vpack.c.bf16 %v817_v43, %v814_v39 }
 0x229   : > { %v2140_v46 = vpop.f32.mrf.mxu0  ;;  %v2148_v47 = vpop.f32.mrf.mxu1 }
 0x22a   : > { %v1168_v48 = vsel %vm1163_vm2, %v1159_v44, 0  ;;  %v1215_v49 = vsel %vm1163_vm2, %v1160_v45, 0 }
 0x22b   : > { %v867_v50 = vpop.f32.mrf.mxu0  ;;  %v920_v51 = vpop.f32.mrf.mxu1  ;;  %2198 = vmatpush3.bf16.xpose.msra.mxu0 %v1168_v48  ;;  %2204 = vmatpush3.bf16.xpose.msra.mxu1 %v1215_v49 }
 0x22c   : > { %2209 = vmatprep.subr.bf16.mxu0 %v2474_v30  ;;  %2215 = vmatprep.subr.bf16.mxu1 %v2474_v30 }
 0x22d   : > { %v2155_v52 = vpop.f32.mrf.mxu0  ;;  %v2163_v53 = vpop.f32.mrf.mxu1 }
 0x22f   : > { %v870_v54 = vpop.f32.mrf.mxu0  ;;  %v923_v55 = vpop.f32.mrf.mxu1 }
 0x230   : > { %v1161_v58 = vpack.c.bf16 %v870_v54, %v867_v50  ;;  %v1162_v59 = vpack.c.bf16 %v923_v55, %v920_v51 }
 0x231   : > { %v2156_v60 = vpop.f32.mrf.mxu0  ;;  %v2164_v61 = vpop.f32.mrf.mxu1 }
 0x232   : > { %v1262_v62 = vsel %vm1163_vm2, %v1161_v58, 0  ;;  %v1309_v63 = vsel %vm1163_vm2, %v1162_v59, 0  ;;  %2200 = vmatmul.mubr.msk.bf16.vlgmr.msra.gmra.mxu0 %vm1163_vm2, %v1155_v56  ;;  %2206 = vmatmul.mubr.msk.bf16.vlgmr.msra.gmra.mxu1 %vm1163_vm2, %v1156_v57 }
 0x233   : > { %v989_v0 = vpop.f32.mrf.mxu0  ;;  %v1042_v1 = vpop.f32.mrf.mxu1  ;;  %2210 = vmatpush3.bf16.xpose.msra.mxu0 %v1262_v62  ;;  %2216 = vmatpush3.bf16.xpose.msra.mxu1 %v1309_v63 }
 0x234   : > { %2211 = vmatprep.mubr.msk.bf16.mxu0 %vm2475_vm1, %v2474_v30  ;;  %2217 = vmatprep.mubr.msk.bf16.mxu1 %vm2475_vm1, %v2474_v30 }
 0x235   : > { %v2171_v2 = vpop.f32.mrf.mxu0  ;;  %v2179_v3 = vpop.f32.mrf.mxu1  ;;  %2221 = vmatprep.subr.bf16.mxu0 %v2474_v30  ;;  %2227 = vmatprep.subr.bf16.mxu1 %v2474_v30 }
 0x237   : > { %v992_v4 = vpop.f32.mrf.mxu0  ;;  %v1045_v5 = vpop.f32.mrf.mxu1 }
 0x238   : > { %v1444_v8 = vpack.c.bf16 %v992_v4, %v989_v0  ;;  %v1445_v9 = vpack.c.bf16 %v1045_v5, %v1042_v1 }
 0x239   : > { %v2172_v10 = vpop.f32.mrf.mxu0  ;;  %v2180_v11 = vpop.f32.mrf.mxu1 }
 0x23a   : > { %2212 = vmatmul.mubr.msk.bf16.vlgmr.msra.gmra.mxu0 %vm1163_vm2, %v1157_v6  ;;  %2218 = vmatmul.mubr.msk.bf16.vlgmr.msra.gmra.mxu1 %vm1163_vm2, %v1158_v7 }
 0x23b   : > { %v2770_v12 = vpop.f32.mrf.mxu0  ;;  %v2772_v13 = vpop.f32.mrf.mxu1  ;;  %2222 = vmatpush3.bf16.msra.mxu0 %v1444_v8  ;;  %2228 = vmatpush3.bf16.msra.mxu1 %v1445_v9 }
 0x23c   : > { %2223 = vmatprep.mubr.msk.bf16.mxu0 %vm2475_vm1, %v2474_v30  ;;  %2233 = vmatprep.subr.bf16.mxu0 %v2474_v30 }
 0x23d   : > { %v2187_v14 = vpop.f32.mrf.mxu0  ;;  %v2195_v15 = vpop.f32.mrf.mxu1  ;;  %2229 = vmatprep.mubr.msk.bf16.mxu1 %vm2475_vm1, %v2474_v30  ;;  %2239 = vmatprep.subr.bf16.mxu1 %v2474_v30 }
 0x23f   : > { %v2780_v16 = vpop.f32.mrf.mxu0  ;;  %v2782_v17 = vpop.f32.mrf.mxu1 }
 0x240   : > { %v1446_v18 = vpack.c.bf16 %v2780_v16, %v2770_v12  ;;  %v1447_v19 = vpack.c.bf16 %v2782_v17, %v2772_v13  ;;  %v2352_v13 = vld [vmem:[%s2924_s7] sm:$0xff]   ;;  %v2353_v17 = vld [vmem:[%s2924_s7 + $0x8] sm:$0xff]  }
 0x241   : > { %v2188_v20 = vpop.f32.mrf.mxu0  ;;  %v2196_v21 = vpop.f32.mrf.mxu1 }
 0x2f2   : > { %v1204_v22 = vpop.f32.mrf.mxu0  ;;  %v1251_v23 = vpop.f32.mrf.mxu1 }
 0x2f3   : > { %v1352_v24 = vsel %vm1163_vm2, %v1204_v22, -inf  ;;  %v1358_v29 = vsel %vm1163_vm2, %v1251_v23, -inf }
 0x2f4   : > { %v2207_v25 = vpop.f32.mrf.mxu1  ;;  %1353 = vmax.xlane.f32.xlu0 %v1352_v24  ;;  %v2201_v26 = vpop.f32.mrf.mxu0 }
 0x2f6   : > { %v1207_v27 = vpop.f32.mrf.mxu0  ;;  %v1254_v28 = vpop.f32.mrf.mxu1 }
 0x2f7   : > { %v1355_v31 = vsel %vm1163_vm2, %v1207_v27, -inf  ;;  %v1361_v36 = vsel %vm1163_vm2, %v1254_v28, -inf }
 0x2f8   : > { %v2208_v32 = vpop.f32.mrf.mxu1  ;;  %1359 = vmax.xlane.f32.xlu0 %v1358_v29  ;;  %1356 = vmax.xlane.f32.xlu1 %v1355_v31  ;;  %v2202_v33 = vpop.f32.mrf.mxu0 }
 0x2fa   : > { %v1298_v34 = vpop.f32.mrf.mxu0  ;;  %v1345_v35 = vpop.f32.mrf.mxu1 }
 0x2fb   : > { %v1364_v37 = vsel %vm1163_vm2, %v1298_v34, -inf  ;;  %v1370_v42 = vsel %vm1163_vm2, %v1345_v35, -inf }
 0x2fc   : > { %v2219_v38 = vpop.f32.mrf.mxu1  ;;  %1362 = vmax.xlane.f32.xlu1 %v1361_v36  ;;  %1365 = vmax.xlane.f32.xlu0 %v1364_v37  ;;  %v2213_v39 = vpop.f32.mrf.mxu0 }
 0x2fe   : > { %v1301_v40 = vpop.f32.mrf.mxu0  ;;  %v1348_v41 = vpop.f32.mrf.mxu1 }
 0x2ff   : > { %v1367_v43 = vsel %vm1163_vm2, %v1301_v40, -inf  ;;  %v1373_v46 = vsel %vm1163_vm2, %v1348_v41, -inf }
 0x300   : > { %v2220_v44 = vpop.f32.mrf.mxu1  ;;  %1371 = vmax.xlane.f32.xlu0 %v1370_v42  ;;  %1368 = vmax.xlane.f32.xlu1 %v1367_v43  ;;  %v2214_v45 = vpop.f32.mrf.mxu0 }
 0x304   : > { %1374 = vmax.xlane.f32.xlu1 %v1373_v46 }
 0x37d   : > { %v1354_v47 = vpop.xlane.xlu0 %1353 }
 0x37e   : > { %v1376_v48 = vsub.f32 %v1204_v22, %v1354_v47 }
 0x380   : > { %v1384_v49 = vmul.f32 1.442695, %v1376_v48 }
 0x381   : > { %v1360_v50 = vpop.xlane.xlu0 %1359  ;;  %v1357_v51 = vpop.xlane.xlu1 %1356 }
 0x382   : > { %2364 = vpow2.f32 %v1384_v49  ;;  %v1378_v52 = vsub.f32 %v1251_v23, %v1360_v50  ;;  %v1377_v53 = vsub.f32 %v1207_v27, %v1357_v51 }
 0x384   : > { %v1388_v54 = vmul.f32 1.442695, %v1378_v52  ;;  %v1386_v55 = vmul.f32 1.442695, %v1377_v53 }
 0x385   : > { %v1363_v56 = vpop.xlane.xlu1 %1362  ;;  %v1366_v57 = vpop.xlane.xlu0 %1365 }
 0x386   : > { %2366 = vpow2.f32 %v1388_v54  ;;  %v1379_v58 = vsub.f32 %v1254_v28, %v1363_v56  ;;  %v1380_v59 = vsub.f32 %v1298_v34, %v1366_v57  ;;  %v2354_v57 = vld [vmem:[%s2924_s7 + $0x10] sm:$0xff]  }
 0x387   : > { %2368 = vpow2.f32 %v1386_v55 }
 0x388   : > { %v1390_v60 = vmul.f32 1.442695, %v1379_v58  ;;  %v1392_v61 = vmul.f32 1.442695, %v1380_v59 }
 0x389   : > { %v1372_v62 = vpop.xlane.xlu0 %1371  ;;  %v1369_v63 = vpop.xlane.xlu1 %1368 }
 0x38a   : > { %2370 = vpow2.f32 %v1390_v60  ;;  %v1382_v0 = vsub.f32 %v1345_v35, %v1372_v62  ;;  %v1381_v1 = vsub.f32 %v1301_v40, %v1369_v63 }
 0x38b   : > { %2372 = vpow2.f32 %v1392_v61 }
 0x38c   : > { %v1396_v2 = vmul.f32 1.442695, %v1382_v0  ;;  %v1394_v3 = vmul.f32 1.442695, %v1381_v1  ;;  %v2355_v0 = vld [vmem:[%s2924_s7 + $0x18] sm:$0xff]  }
 0x38d   : > { %v1375_v4 = vpop.xlane.xlu1 %1374 }
 0x38e   : > { %2374 = vpow2.f32 %v1396_v2  ;;  %v1383_v5 = vsub.f32 %v1348_v41, %v1375_v4 }
 0x38f   : > { %v2365_v6 = vpop.eup %2364  ;;  %2376 = vpow2.f32 %v1394_v3 }
 0x390   : > { %v1398_v7 = vmul.f32 1.442695, %v1383_v5  ;;  %v1400_v8 = vsel %vm1163_vm2, %v2365_v6, 0.0 }
 0x391   : > { %1401 = vadd.xlane.f32.xlu0 %v1400_v8 }
 0x392   : > { %2378 = vpow2.f32 %v1398_v7 }
 0x393   : > { %v2367_v9 = vpop.eup %2366 }
 0x394   : > { %v2369_v10 = vpop.eup %2368  ;;  %v1406_v11 = vsel %vm1163_vm2, %v2367_v9, 0.0 }
 0x395   : > { %1407 = vadd.xlane.f32.xlu0 %v1406_v11  ;;  %v1403_v14 = vsel %vm1163_vm2, %v2369_v10, 0.0 }
 0x396   : > { %1404 = vadd.xlane.f32.xlu1 %v1403_v14 }
 0x397   : > { %v2371_v15 = vpop.eup %2370 }
 0x398   : > { %v2373_v20 = vpop.eup %2372  ;;  %v1409_v21 = vsel %vm1163_vm2, %v2371_v15, 0.0 }
 0x399   : > { %v1412_v22 = vsel %vm1163_vm2, %v2373_v20, 0.0 }
 0x39a   : > { %1413 = vadd.xlane.f32.xlu0 %v1412_v22  ;;  %1410 = vadd.xlane.f32.xlu1 %v1409_v21 }
 0x39b   : > { %v2375_v23 = vpop.eup %2374 }
 0x39c   : > { %v2377_v24 = vpop.eup %2376  ;;  %v1418_v25 = vsel %vm1163_vm2, %v2375_v23, 0.0 }
 0x39d   : > { %v1415_v26 = vsel %vm1163_vm2, %v2377_v24, 0.0 }
 0x39e   : > { %1419 = vadd.xlane.f32.xlu0 %v1418_v25  ;;  %1416 = vadd.xlane.f32.xlu1 %v1415_v26 }
 0x39f   : > { %v2379_v27 = vpop.eup %2378 }
 0x3a0   : > { %v1421_v28 = vsel %vm1163_vm2, %v2379_v27, 0.0 }
 0x3a2   : > { %1422 = vadd.xlane.f32.xlu1 %v1421_v28 }
 0x41a   : > { %v1402_v29 = vpop.xlane.xlu0 %1401 }
 0x41b   : > { %2380 = vrcp.f32 %v1402_v29 }
 0x41e   : > { %v1408_v31 = vpop.xlane.xlu0 %1407 }
 0x41f   : > { %v1405_v32 = vpop.xlane.xlu1 %1404 }
 0x420   : > { %2382 = vrcp.f32 %v1405_v32 }
 0x421   : > { %2384 = vrcp.f32 %v1408_v31 }
 0x423   : > { %v1414_v33 = vpop.xlane.xlu0 %1413  ;;  %v1411_v34 = vpop.xlane.xlu1 %1410 }
 0x424   : > { %2386 = vrcp.f32 %v1411_v34 }
 0x425   : > { %2388 = vrcp.f32 %v1414_v33 }
 0x427   : > { %v1420_v35 = vpop.xlane.xlu0 %1419  ;;  %v1417_v36 = vpop.xlane.xlu1 %1416 }
 0x428   : > { %2390 = vrcp.f32 %v1417_v36  ;;  %v2381_v37 = vpop.eup %2380 }
 0x429   : > { %2392 = vrcp.f32 %v1420_v35  ;;  %v1432_v40 = vmul.f32 %v2381_v37, %v2365_v6 }
 0x42b   : > { %v1423_v38 = vpop.xlane.xlu1 %1422 }
 0x42c   : > { %2394 = vrcp.f32 %v1423_v38 }
 0x42d   : > { %v2383_v39 = vpop.eup %2382 }
 0x42e   : > { %v1433_v41 = vmul.f32 %v2383_v39, %v2369_v10  ;;  %v2385_v42 = vpop.eup %2384  ;;  %v2032_v39 = vld [vmem:[%s2925_s8] ss:$0 sm:$0xff] }
 0x42f   : > { %v1434_v45 = vmul.f32 %v2385_v42, %v2367_v9 }
 0x430   : > { %v1440_v43 = vpack.c.bf16 %v1433_v41, %v1432_v40 }
 0x431   : > { %v2387_v44 = vpop.eup %2386 }
 0x432   : > { %2224 = vmatmul.mubr.msk.bf16.vlgmr.msra.gmra.mxu0 %vm1163_vm2, %v1440_v43  ;;  %v1435_v46 = vmul.f32 %v2387_v44, %v2371_v15  ;;  %v2389_v47 = vpop.eup %2388 }
 0x433   : > { %2234 = vmatpush3.bf16.msra.mxu0 %v1446_v18  ;;  %2235 = vmatprep.mubr.msk.bf16.mxu0 %vm2475_vm1, %v2474_v30  ;;  %v1436_v51 = vmul.f32 %v2389_v47, %v2373_v20 }
 0x434   : > { %2245 = vmatprep.subr.bf16.mxu0 %v2474_v30  ;;  %v1441_v48 = vpack.c.bf16 %v1435_v46, %v1434_v45 }
 0x435   : > { %v2391_v49 = vpop.eup %2390 }
 0x436   : > { %v2393_v50 = vpop.eup %2392  ;;  %2230 = vmatmul.mubr.msk.bf16.vlgmr.msra.gmra.mxu1 %vm1163_vm2, %v1441_v48  ;;  %v1437_v52 = vmul.f32 %v2391_v49, %v2377_v24 }
 0x437   : > { %2240 = vmatpush3.bf16.msra.mxu1 %v1447_v19  ;;  %2241 = vmatprep.mubr.msk.bf16.mxu1 %vm2475_vm1, %v2474_v30  ;;  %v1438_v18 = vmul.f32 %v2393_v50, %v2375_v23 }
 0x438   : > { %v1442_v16 = vpack.c.bf16 %v1437_v52, %v1436_v51  ;;  %2251 = vmatprep.subr.bf16.mxu1 %v2474_v30 }
 0x439   : > { %v2395_v12 = vpop.eup %2394 }
 0x43a   : > { %v1439_v53 = vmul.f32 %v2395_v12, %v2379_v27  ;;  %2236 = vmatmul.mubr.msk.bf16.vlgmr.msra.gmra.mxu0 %vm1163_vm2, %v1442_v16 }
 0x43b   : > { %2247 = vmatprep.mubr.msk.bf16.mxu0 %vm2475_vm1, %v2474_v30  ;;  %2246 = vmatpush3.bf16.msra.mxu0 %v2352_v13 }
 0x43c   : > { %v1443_v54 = vpack.c.bf16 %v1439_v53, %v1438_v18  ;;  %2257 = vmatprep.subr.bf16.mxu0 %v2474_v30 }
 0x43e   : > { %2242 = vmatmul.mubr.msk.bf16.vlgmr.msra.gmra.mxu1 %vm1163_vm2, %v1443_v54 }
 0x43f   : > { %2253 = vmatprep.mubr.msk.bf16.mxu1 %vm2475_vm1, %v2474_v30  ;;  %2252 = vmatpush3.bf16.msra.mxu1 %v2353_v17 }
 0x440   : > { %2263 = vmatprep.subr.bf16.mxu1 %v2474_v30 }
 0x4f2   : > { %v1485_v19 = vpop.f32.mrf.mxu0 }
 0x4f4   : > { %v2225_v55 = vpop.f32.mrf.mxu0 }
 0x4f6   : > { %v1488_v56 = vpop.f32.mrf.mxu0  ;;  %v1529_v59 = vpop.f32.mrf.mxu1 }
 0x4f7   : > { %v1624_v58 = vpack.c.bf16 %v1488_v56, %v1485_v19 }
 0x4f8   : > { %v2226_v60 = vpop.f32.mrf.mxu0  ;;  %v2231_v61 = vpop.f32.mrf.mxu1 }
 0x4f9   : > { %2248 = vmatmul.mubr.msk.bf16.vlgmr.msra.gmra.mxu0 %vm1163_vm2, %v1624_v58 }
 0x4fa   : > { %2258 = vmatpush3.bf16.msra.mxu0 %v2354_v57  ;;  %2259 = vmatprep.mubr.msk.bf16.mxu0 %vm2475_vm1, %v2474_v30  ;;  %v1532_v62 = vpop.f32.mrf.mxu1  ;;  %v1573_v63 = vpop.f32.mrf.mxu0 }
 0x4fb   : > { %v1625_v1 = vpack.c.bf16 %v1532_v62, %v1529_v59 }
 0x4fc   : > { %v2232_v2 = vpop.f32.mrf.mxu1  ;;  %v2237_v3 = vpop.f32.mrf.mxu0 }
 0x4fd   : > { %2254 = vmatmul.mubr.msk.bf16.vlgmr.msra.gmra.mxu1 %vm1163_vm2, %v1625_v1 }
 0x4fe   : > { %v1576_v4 = vpop.f32.mrf.mxu0  ;;  %v1617_v5 = vpop.f32.mrf.mxu1  ;;  %2264 = vmatpush3.bf16.msra.mxu1 %v2355_v0  ;;  %2265 = vmatprep.mubr.msk.bf16.mxu1 %vm2475_vm1, %v2474_v30 }
 0x4ff   : > { %v1626_v6 = vpack.c.bf16 %v1576_v4, %v1573_v63 }
 0x500   : > { %v2238_v7 = vpop.f32.mrf.mxu0  ;;  %v2243_v8 = vpop.f32.mrf.mxu1 }
 0x501   : > { %2260 = vmatmul.mubr.msk.bf16.vlgmr.msra.gmra.mxu0 %vm1163_vm2, %v1626_v6 }
 0x502   : > { %v1620_v9 = vpop.f32.mrf.mxu1 }
 0x503   : > { %v1627_v10 = vpack.c.bf16 %v1620_v9, %v1617_v5 }
 0x504   : > { %v2244_v11 = vpop.f32.mrf.mxu1 }
 0x505   : > { %2266 = vmatmul.mubr.msk.bf16.vlgmr.msra.gmra.mxu1 %vm1163_vm2, %v1627_v10 }
 0x5b9   : > { %v1679_v14 = vpop.f32.mrf.mxu0 }
 0x5ba   : > { %v1836_v26 = vsel %vm387_vm0, %v1679_v14, 0.0 }
 0x5bb   : > { %v2249_v15 = vpop.f32.mrf.mxu0 }
 0x5bd   : > { %v1682_v20 = vpop.f32.mrf.mxu0  ;;  %v1729_v21 = vpop.f32.mrf.mxu1 }
 0x5be   : > { %v1837_v30 = vsel %vm387_vm0, %v1729_v21, 0.0  ;;  %v1843_v36 = vsel %vm387_vm0, %v1682_v20, 0.0 }
 0x5bf   : > { %v2250_v22 = vpop.f32.mrf.mxu0  ;;  %v2255_v23 = vpop.f32.mrf.mxu1  ;;  %v1838_v28 = vadd.f32 %v1837_v30, %v1836_v26 }
 0x5c1   : > { %v1732_v24 = vpop.f32.mrf.mxu1  ;;  %v1779_v25 = vpop.f32.mrf.mxu0 }
 0x5c2   : > { %v1839_v27 = vsel %vm387_vm0, %v1779_v25, 0.0  ;;  %v1844_v32 = vsel %vm387_vm0, %v1732_v24, 0.0 }
 0x5c3   : > { %v2256_v29 = vpop.f32.mrf.mxu1  ;;  %v2261_v31 = vpop.f32.mrf.mxu0  ;;  %v1840_v33 = vadd.f32 %v1839_v27, %v1838_v28  ;;  %v1845_v40 = vadd.f32 %v1844_v32, %v1843_v36 }
 0x5c5   : > { %v1782_v34 = vpop.f32.mrf.mxu0  ;;  %v1829_v35 = vpop.f32.mrf.mxu1 }
 0x5c6   : > { %v1846_v37 = vsel %vm387_vm0, %v1782_v34, 0.0  ;;  %v1841_v38 = vsel %vm387_vm0, %v1829_v35, 0.0 }
 0x5c7   : > { %v1842_v41 = vadd.f32 %v1841_v38, %v1840_v33  ;;  %v2262_v42 = vpop.f32.mrf.mxu0  ;;  %v2267_v43 = vpop.f32.mrf.mxu1  ;;  %v1847_v44 = vadd.f32 %v1846_v37, %v1845_v40 }
 0x5c9   : > { %v1857_v45 = vadd.f32 %v2032_v39, %v1842_v41  ;;  %v1832_v46 = vpop.f32.mrf.mxu1 }
 0x5ca   : > { %v1848_v47 = vsel %vm387_vm0, %v1832_v46, 0.0 }
 0x5cb   : > { %1859 = vst.msk [vmem:[%s365_s15] sm:$0xff] %vm387_vm0, %v1857_v45  ;;  %v1849_v48 = vadd.f32 %v1848_v47, %v1847_v44  ;;  %v2268_v49 = vpop.f32.mrf.mxu1 }
 0x5cd   : > { %v1858_v50 = vadd.f32 %v2032_v39, %v1849_v48 }
 0x5cf   : > { %1860 = vst.msk [vmem:[%s365_s15 + $0x8] sm:$0xff] %vm387_vm0, %v1858_v50 }
 0x5d0   : > { %2409 = shalt.err (!%p2406_p5)
}
 0x5d1   : > { %s2410_s25 = scalar_lea.hbm %s2865_s23, 256  ;;  %s2414_s18 = scalar_lea.hbm %s2926_s9, 512 }
 0x5d2   : > { %p2411_p6 = scmp.ne.s32.totalorder %s2865_s23, %s2410_s25  ;;  %p2415_p10 = scmp.lt.s32.totalorder %s2865_s23, %s2926_s9 }
 0x5d3   : > { %p2416_p11 = scmp.lt.s32.totalorder %s2414_s18, %s2410_s25 }
 0x5d4   : > { %p2412_p7 = pnand %p2411_p6, %p2569_p4 }
 0x5d5   : > { %p2417_p12 = por %p2416_p11, %p2415_p10 }
 0x5d6   : > { %p2413_p9 = pneg %p2412_p7 }
 0x5d8   : > { %p2418_p13 = pnand %p2417_p12, %p2413_p9 }
 0x5da   : > { %2421 = shalt.err (!%p2418_p13)
}
 0x5db   : > { %s2477_s24 = smov 128   ;;  %s2478_s27 = smov 8  }
 0x5dc   : > { %2269 = dma.vmem_to_hbm [thread:$0]  (%p2569_p4), %s2867_s16, 256, %s2865_s23, %s2872_s12, %s2477_s24, %s2477_s24, %s2478_s27  }
 0x5dd PF: > { %p2275_p0 = scmp.ge.s32.totalorder %s2472_s14, 2  ;;  %s1892_s28 = sand.u32 1, %s2452_s30  }
 0x5de   : > { %s1893_s25 = scalar_lea.sflag [#allocation3], %s1892_s28 }
 0x5df   : > { %p2272_p1 = pnand %p2275_p0, %p2576_p8 }
 0x5e1   : > { %p2273_p2 = pneg %p2272_p1 }
 0x5e3   : > { %2447 = dma.done.wait (%p2273_p2), %s1893_s25, 256  }
 0x5e4   : > { %2449 = vsyncadd (%p2273_p2), %s1893_s25, 4294967040  ;;  %s22_s14 = sadd.s32 1, %s2472_s14   ;;  %s2929_s30 = smov %s2456_s10 }
 0x5e5   : > { %p19_p3 = scmp.ge.s32.totalorder %s22_s14, 4   ;;  %s2930_s10 = smov %s2460_s11 }
 0x5e6   : > { %s2931_s11 = smov %s2582_s22  ;;  %s2932_s12 = smov %s2468_s13 }
 0x5e7   : > { %s2933_s13 = smov %s2935_s17  ;;  %21 = sbr.rel (!%p19_p3) target bundleno = 4 (0x4), region = 94 }
 0x5ec   :  { %1898 = vsyncpa [#allocation3], 1 }
 0x5ed   :  { %1900 = vsyncpa [#allocation3 + $0x1], 1 }

</bundles_post_ra>
